<compile_context>
chip_gen: v7x
topology: tpu7x:2x2x1
jax: 0.10.0
libtpu: 0.0.40
codegen_flags: <defaults>
</compile_context>

<pallas_src>
import jax
import jax.numpy as jnp
import numpy as np
from jax.experimental import pallas as pl
from jax.experimental.pallas import tpu as pltpu

_FAR = 1e15      # coordinate pushed onto invalid targets -> d2 ~ 3e30 (finite, no NaN)
_NO_TGT = 1e29   # any real min-d2 is << this; >= it means "saw no valid target"


def _p2p_loss_kernel(src_t_ref, tgt_ref, out_ref, min_ref):
    # src_t_ref: (Bt, 3, Np)   source points, transposed (points on lanes)
    # tgt_ref:   (Bt, TM, 3)   one tile of target points (points on sublanes)
    # out_ref:   (Bt, 1, 128)  per-batch loss broadcast across lanes (lane-dense)
    # min_ref:   (Bt, 1, Np)   running min squared distance per source point
    k = pl.program_id(1)

    @pl.when(k == 0)
    def _():
        min_ref[...] = jnp.full_like(min_ref, jnp.float32(10.0 * _NO_TGT))

    sx = src_t_ref[:, 0:1, :]                     # (Bt, 1, Np)
    sy = src_t_ref[:, 1:2, :]
    sz = src_t_ref[:, 2:3, :]
    tx = tgt_ref[:, :, 0:1]                       # (Bt, TM, 1)
    ty = tgt_ref[:, :, 1:2]
    tz = tgt_ref[:, :, 2:3]

    # move_zero_point: a target point is valid iff any coordinate != 0.
    # Invalid / padded targets are pushed far away on these small (Bt,TM,1)
    # slices, so the full-size d2 needs no masking op and stays finite.
    invalid_t = jnp.logical_not((tx != 0.0) | (ty != 0.0) | (tz != 0.0))
    far = jnp.float32(_FAR)
    tx = jnp.where(invalid_t, far, tx)
    ty = jnp.where(invalid_t, far, ty)
    tz = jnp.where(invalid_t, far, tz)

    # Pairwise squared distances, accumulated coordinate-by-coordinate so at
    # most ~2-3 full-size (Bt, TM, Np) arrays are live at once (VPU-bound).
    d = tx - sx
    d2 = d * d
    d = ty - sy
    d2 = d2 + d * d
    d = tz - sz
    d2 = d2 + d * d                                # (Bt, TM, Np)

    # Min over this tile's targets (sublane reduce -> XLU slot), fold into the
    # running minimum kept across target tiles.
    tile_min = jnp.min(d2, axis=1, keepdims=True)  # (Bt, 1, Np)
    min_ref[...] = jnp.minimum(min_ref[...], tile_min)

    @pl.when(k == pl.num_programs(1) - 1)
    def _():
        # move_zero_point on sources: valid iff any coordinate != 0.
        valid_s = (sx != 0.0) | (sy != 0.0) | (sz != 0.0)       # (Bt, 1, Np)
        min_d2 = min_ref[...]
        # Drop padded / all-zero sources; also zero sources that never saw a
        # valid target (the cKDTree reference would throw on an empty tree).
        keep = valid_s & (min_d2 < jnp.float32(_NO_TGT))
        min_d2 = jnp.where(keep, min_d2, 0.0)
        n_valid = jnp.sum(valid_s.astype(jnp.float32), axis=-1, keepdims=True)
        sum_d2 = jnp.sum(min_d2, axis=-1, keepdims=True)        # (Bt, 1, 1)
        # == torch.nn.MSELoss()(source, nearest_target): mean over N_valid*3;
        # all-padding batches give 0 (sliced off in the wrapper anyway).
        loss = sum_d2 / (3.0 * jnp.maximum(n_valid, 1.0))
        out_ref[...] = jnp.broadcast_to(loss, out_ref.shape)


def _round_up(x, m):
    return (x + m - 1) // m * m


def _vmem_capacity_bytes():
    try:
        return int(pltpu.get_tpu_info().vmem_capacity_bytes)
    except Exception:
        return 64 * 1024 * 1024  # conservative fallback (v7x per-core VMEM)


def _plan_tiles(B, N, M):
    """Pick (Bt, Np, TM, Mp, vmem_limit) from the chip's actual VMEM size."""
    Np = max(128, _round_up(N, 128))            # source points on lanes
    M8 = max(8, _round_up(M, 8))                # target points on sublanes
    cap = _vmem_capacity_bytes()
    # Explicit limit: well above the 16/32 MiB scoped defaults, below physical.
    vmem_limit = int(min(0.70 * cap, 100 * 1024 * 1024))
    budget = int(0.80 * vmem_limit)             # headroom for unmodeled temps

    # >= 2 batch grid steps whenever B >= 2 so both v7x TensorCores get work;
    # cap batches-per-step so there is room left for a large target tile TM.
    Bt = min(max(1, (B + 1) // 2), 16)
    while True:
        # TM-independent bytes: src double-buffer (3->8 sublanes), running-min
        # scratch, output-block double-buffer.
        fixed = Bt * (2 * 8 * Np + 8 * Np + 2 * 8 * 128) * 4
        # per-unit-of-TM bytes: ~3 live (Bt,TM,Np) f32 temps in the kernel plus
        # the double-buffered (Bt, TM, 3->128-lane-padded) target block.
        per_tm = Bt * (3 * Np + 2 * 128) * 4
        tm_max = (budget - fixed) // per_tm if budget > fixed else 0
        tm_max = (tm_max // 8) * 8
        if tm_max >= 8 or Bt == 1:
            break
        Bt = max(1, Bt // 2)
    TM = int(min(max(tm_max, 8), M8, 2048))
    Mp = max(TM, _round_up(max(M, 1), TM))
    return Bt, Np, TM, Mp, vmem_limit


def kd_point_to_point_loss(source_pc, target_pc):
    """source_pc: (B, N, 3) f32, target_pc: (B, M, 3) f32 -> scalar f32."""
    source_pc = source_pc.astype(jnp.float32)
    target_pc = target_pc.astype(jnp.float32)
    B, N, _ = source_pc.shape
    M = target_pc.shape[1]

    Bt, Np, TM, Mp, vmem_limit = _plan_tiles(B, N, M)
    B_pad = _round_up(B, Bt)

    # Zero padding is free correctness-wise: all-zero points are invalid by
    # construction (move_zero_point) and are masked out inside the kernel.
    src_t = jnp.zeros((B_pad, 3, Np), jnp.float32).at[:B, :, :N].set(
        jnp.transpose(source_pc, (0, 2, 1)))
    tgt = jnp.zeros((B_pad, Mp, 3), jnp.float32).at[:B, :M, :].set(target_pc)

    grid = (B_pad // Bt, Mp // TM)
    flops = int(B_pad) * int(Np) * int(Mp) * 8
    bytes_accessed = int(src_t.size + tgt.size + B_pad * 128) * 4

    per_batch = pl.pallas_call(
        _p2p_loss_kernel,
        out_shape=jax.ShapeDtypeStruct((B_pad, 1, 128), jnp.float32),
        grid=grid,
        in_specs=[
            pl.BlockSpec((Bt, 3, Np), lambda b, k: (b, 0, 0)),
            pl.BlockSpec((Bt, TM, 3), lambda b, k: (b, k, 0)),
        ],
        out_specs=pl.BlockSpec((Bt, 1, 128), lambda b, k: (b, 0, 0)),
        scratch_shapes=[pltpu.VMEM((Bt, 1, Np), jnp.float32)],
        compiler_params=pltpu.CompilerParams(
            dimension_semantics=("parallel", "arbitrary"),
            vmem_limit_bytes=vmem_limit),
        cost_estimate=pl.CostEstimate(
            flops=flops, transcendentals=0, bytes_accessed=bytes_accessed),
    )(src_t, tgt)

    return jnp.mean(per_batch[:B, 0, 0])


def _reference(source_pc, target_pc):
    """Pure-numpy reference mirroring the PyTorch module (brute-force exact NN)."""
    src = np.asarray(source_pc, np.float32)
    tgt = np.asarray(target_pc, np.float32)
    losses = []
    for b in range(src.shape[0]):
        s = src[b].reshape(-1, 3)
        t = tgt[b].reshape(-1, 3)
        s = s[np.any(s != 0.0, axis=-1)]
        t = t[np.any(t != 0.0, axis=-1)]
        d2 = ((s[:, None, :] - t[None, :, :]) ** 2).sum(-1)
        nn = d2.argmin(axis=1)
        losses.append(((s - t[nn]) ** 2).mean())
    return float(np.mean(losses))


if __name__ == "__main__":
    key = jax.random.PRNGKey(0)
    k1, k2 = jax.random.split(key)
    B, N, M = 2, 64, 48
    src = jax.random.normal(k1, (B, N, 3), dtype=jnp.float32)
    tgt = jax.random.normal(k2, (B, M, 3), dtype=jnp.float32)
    # zero out some points to exercise move_zero_point filtering
    src = src.at[:, :5, :].set(0.0)
    tgt = tgt.at[:, :3, :].set(0.0)

    out = kd_point_to_point_loss(src, tgt)
    out = jax.block_until_ready(out)

    ref = _reference(src, tgt)
    assert np.allclose(float(out), ref, rtol=1e-4, atol=1e-5), (float(out), ref)
    print("KERNEL_OK")
</pallas_src>

<mosaic_0001>
module attributes {stable_mosaic.version = 11 : i64} {
  func.func @_p2p_loss_kernel(%arg0: i32, %arg1: i32, %arg2: memref<1x3x128xf32, #tpu.memory_space<vmem>>, %arg3: memref<1x48x3xf32, #tpu.memory_space<vmem>>, %arg4: memref<1x1x128xf32, #tpu.memory_space<vmem>>, %arg5: memref<1x1x128xf32, #tpu.memory_space<vmem>>) attributes {dimension_semantics = [#tpu.dimension_semantics<parallel>, #tpu.dimension_semantics<arbitrary>], iteration_bounds = array<i64: 2, 1>, scalar_prefetch = 0 : i64, scratch_operands = 1 : i64, tpu.core_type = #tpu.core_type<tc>, window_params = [{transform_indices = @transform_0, window_bounds = array<i64: 1, 3, 128>}, {transform_indices = @transform_1, window_bounds = array<i64: 1, 48, 3>}, {transform_indices = @transform_2, window_bounds = array<i64: 1, 1, 128>}]} {
    %c0_i32 = arith.constant 0 : i32
    %0 = arith.cmpi eq, %arg1, %c0_i32 : i32
    %1 = arith.extui %0 : i1 to i32
    %c0_i32_0 = arith.constant 0 : i32
    %2 = arith.cmpi ne, %1, %c0_i32_0 : i32
    scf.if %2 {
      %cst_31 = arith.constant 1.000000e+30 : f32
      %46 = vector.broadcast %cst_31 : f32 to vector<1x1x128xf32>
      %c0_32 = arith.constant 0 : index
      %c0_33 = arith.constant 0 : index
      %c0_34 = arith.constant 0 : index
      %47 = vector.load %arg5[%c0_32, %c0_33, %c0_34] : memref<1x1x128xf32, #tpu.memory_space<vmem>>, vector<1x1x128xf32>
      tpu.vector_store %arg5[%c0_32, %c0_33, %c0_34], %46 {strides = array<i32>} : memref<1x1x128xf32, #tpu.memory_space<vmem>>, vector<1x1x128xf32>,
    } else {
    }
    %c0 = arith.constant 0 : index
    %c0_1 = arith.constant 0 : index
    %c0_2 = arith.constant 0 : index
    %3 = vector.load %arg2[%c0, %c0_1, %c0_2] : memref<1x3x128xf32, #tpu.memory_space<vmem>>, vector<1x1x128xf32>
    %c0_3 = arith.constant 0 : index
    %c1 = arith.constant 1 : index
    %c0_4 = arith.constant 0 : index
    %4 = vector.load %arg2[%c0_3, %c1, %c0_4] : memref<1x3x128xf32, #tpu.memory_space<vmem>>, vector<1x1x128xf32>
    %c0_5 = arith.constant 0 : index
    %c2 = arith.constant 2 : index
    %c0_6 = arith.constant 0 : index
    %5 = vector.load %arg2[%c0_5, %c2, %c0_6] : memref<1x3x128xf32, #tpu.memory_space<vmem>>, vector<1x1x128xf32>
    %c0_7 = arith.constant 0 : index
    %c0_8 = arith.constant 0 : index
    %c0_9 = arith.constant 0 : index
    %6 = vector.load %arg3[%c0_7, %c0_8, %c0_9] : memref<1x48x3xf32, #tpu.memory_space<vmem>>, vector<1x48x1xf32>
    %c0_10 = arith.constant 0 : index
    %c0_11 = arith.constant 0 : index
    %c1_12 = arith.constant 1 : index
    %7 = vector.load %arg3[%c0_10, %c0_11, %c1_12] : memref<1x48x3xf32, #tpu.memory_space<vmem>>, vector<1x48x1xf32>
    %c0_13 = arith.constant 0 : index
    %c0_14 = arith.constant 0 : index
    %c2_15 = arith.constant 2 : index
    %8 = vector.load %arg3[%c0_13, %c0_14, %c2_15] : memref<1x48x3xf32, #tpu.memory_space<vmem>>, vector<1x48x1xf32>
    %cst = arith.constant 0.000000e+00 : f32
    %9 = vector.broadcast %cst : f32 to vector<1x48x1xf32>
    %10 = arith.cmpf one, %6, %9 : vector<1x48x1xf32>
    %cst_16 = arith.constant 0.000000e+00 : f32
    %11 = vector.broadcast %cst_16 : f32 to vector<1x48x1xf32>
    %12 = arith.cmpf one, %7, %11 : vector<1x48x1xf32>
    %13 = arith.ori %10, %12 : vector<1x48x1xi1>
    %cst_17 = arith.constant 0.000000e+00 : f32
    %14 = vector.broadcast %cst_17 : f32 to vector<1x48x1xf32>
    %15 = arith.cmpf one, %8, %14 : vector<1x48x1xf32>
    %16 = arith.ori %13, %15 : vector<1x48x1xi1>
    %cst_18 = arith.constant dense<true> : vector<1x48x1xi1>
    %17 = arith.xori %16, %cst_18 : vector<1x48x1xi1>
    %cst_19 = arith.constant 9.99999986E+14 : f32
    %18 = vector.broadcast %cst_19 : f32 to vector<1x48x1xf32>
    %19 = arith.select %17, %18, %6 : vector<1x48x1xi1>, vector<1x48x1xf32>
    %cst_20 = arith.constant 9.99999986E+14 : f32
    %20 = vector.broadcast %cst_20 : f32 to vector<1x48x1xf32>
    %21 = arith.select %17, %20, %7 : vector<1x48x1xi1>, vector<1x48x1xf32>
    %cst_21 = arith.constant 9.99999986E+14 : f32
    %22 = vector.broadcast %cst_21 : f32 to vector<1x48x1xf32>
    %23 = arith.select %17, %22, %8 : vector<1x48x1xi1>, vector<1x48x1xf32>
    %24 = vector.broadcast %19 : vector<1x48x1xf32> to vector<1x48x128xf32>
    %25 = vector.broadcast %3 : vector<1x1x128xf32> to vector<1x48x128xf32>
    %26 = arith.subf %24, %25 : vector<1x48x128xf32>
    %27 = arith.mulf %26, %26 : vector<1x48x128xf32>
    %28 = vector.broadcast %21 : vector<1x48x1xf32> to vector<1x48x128xf32>
    %29 = vector.broadcast %4 : vector<1x1x128xf32> to vector<1x48x128xf32>
    %30 = arith.subf %28, %29 : vector<1x48x128xf32>
    %31 = arith.mulf %30, %30 : vector<1x48x128xf32>
    %32 = arith.addf %27, %31 : vector<1x48x128xf32>
    %33 = vector.broadcast %23 : vector<1x48x1xf32> to vector<1x48x128xf32>
    %34 = vector.broadcast %5 : vector<1x1x128xf32> to vector<1x48x128xf32>
    %35 = arith.subf %33, %34 : vector<1x48x128xf32>
    %36 = arith.mulf %35, %35 : vector<1x48x128xf32>
    %37 = arith.addf %32, %36 : vector<1x48x128xf32>
    %cst_22 = arith.constant dense<0x7F800000> : vector<1x128xf32>
    %38 = vector.multi_reduction <minimumf>, %37, %cst_22 [1] : vector<1x48x128xf32> to vector<1x128xf32>
    %39 = vector.shape_cast %38 : vector<1x128xf32> to vector<1x1x128xf32>
    %c0_23 = arith.constant 0 : index
    %c0_24 = arith.constant 0 : index
    %c0_25 = arith.constant 0 : index
    %40 = vector.load %arg5[%c0_23, %c0_24, %c0_25] : memref<1x1x128xf32, #tpu.memory_space<vmem>>, vector<1x1x128xf32>
    %41 = arith.minimumf %40, %39 : vector<1x1x128xf32>
    %c0_26 = arith.constant 0 : index
    %c0_27 = arith.constant 0 : index
    %c0_28 = arith.constant 0 : index
    %42 = vector.load %arg5[%c0_26, %c0_27, %c0_28] : memref<1x1x128xf32, #tpu.memory_space<vmem>>, vector<1x1x128xf32>
    tpu.vector_store %arg5[%c0_26, %c0_27, %c0_28], %41 {strides = array<i32>} : memref<1x1x128xf32, #tpu.memory_space<vmem>>, vector<1x1x128xf32>,
    %c0_i32_29 = arith.constant 0 : i32
    %43 = arith.cmpi eq, %arg1, %c0_i32_29 : i32
    %44 = arith.extui %43 : i1 to i32
    %c0_i32_30 = arith.constant 0 : i32
    %45 = arith.cmpi ne, %44, %c0_i32_30 : i32
    scf.if %45 {
      %cst_31 = arith.constant 0.000000e+00 : f32
      %46 = vector.broadcast %cst_31 : f32 to vector<1x1x128xf32>
      %47 = arith.cmpf one, %3, %46 : vector<1x1x128xf32>
      %cst_32 = arith.constant 0.000000e+00 : f32
      %48 = vector.broadcast %cst_32 : f32 to vector<1x1x128xf32>
      %49 = arith.cmpf one, %4, %48 : vector<1x1x128xf32>
      %50 = arith.ori %47, %49 : vector<1x1x128xi1>
      %cst_33 = arith.constant 0.000000e+00 : f32
      %51 = vector.broadcast %cst_33 : f32 to vector<1x1x128xf32>
      %52 = arith.cmpf one, %5, %51 : vector<1x1x128xf32>
      %53 = arith.ori %50, %52 : vector<1x1x128xi1>
      %c0_34 = arith.constant 0 : index
      %c0_35 = arith.constant 0 : index
      %c0_36 = arith.constant 0 : index
      %54 = vector.load %arg5[%c0_34, %c0_35, %c0_36] : memref<1x1x128xf32, #tpu.memory_space<vmem>>, vector<1x1x128xf32>
      %cst_37 = arith.constant 1.000000e+29 : f32
      %55 = vector.broadcast %cst_37 : f32 to vector<1x1x128xf32>
      %56 = arith.cmpf olt, %54, %55 : vector<1x1x128xf32>
      %57 = arith.andi %53, %56 : vector<1x1x128xi1>
      %cst_38 = arith.constant 0.000000e+00 : f32
      %58 = vector.broadcast %cst_38 : f32 to vector<1x1x128xf32>
      %59 = arith.select %57, %54, %58 : vector<1x1x128xi1>, vector<1x1x128xf32>
      %60 = arith.extui %53 : vector<1x1x128xi1> to vector<1x1x128xi32>
      %61 = arith.sitofp %60 : vector<1x1x128xi32> to vector<1x1x128xf32>
      %cst_39 = arith.constant dense<0.000000e+00> : vector<1x1xf32>
      %62 = vector.multi_reduction <add>, %61, %cst_39 [2] : vector<1x1x128xf32> to vector<1x1xf32>
      %63 = vector.shape_cast %62 : vector<1x1xf32> to vector<1x1x1xf32>
      %cst_40 = arith.constant dense<0.000000e+00> : vector<1x1xf32>
      %64 = vector.multi_reduction <add>, %59, %cst_40 [2] : vector<1x1x128xf32> to vector<1x1xf32>
      %65 = vector.shape_cast %64 : vector<1x1xf32> to vector<1x1x1xf32>
      %cst_41 = arith.constant 1.000000e+00 : f32
      %66 = vector.broadcast %cst_41 : f32 to vector<1x1x1xf32>
      %67 = arith.maximumf %63, %66 : vector<1x1x1xf32>
      %cst_42 = arith.constant 3.000000e+00 : f32
      %68 = vector.broadcast %cst_42 : f32 to vector<1x1x1xf32>
      %69 = arith.mulf %68, %67 : vector<1x1x1xf32>
      %70 = arith.divf %65, %69 : vector<1x1x1xf32>
      %71 = vector.shape_cast %70 : vector<1x1x1xf32> to vector<1x1x1xf32>
      %72 = vector.broadcast %71 : vector<1x1x1xf32> to vector<1x1x128xf32>
      %c0_43 = arith.constant 0 : index
      %c0_44 = arith.constant 0 : index
      %c0_45 = arith.constant 0 : index
      %73 = vector.load %arg4[%c0_43, %c0_44, %c0_45] : memref<1x1x128xf32, #tpu.memory_space<vmem>>, vector<1x1x128xf32>
      tpu.vector_store %arg4[%c0_43, %c0_44, %c0_45], %72 {strides = array<i32>} : memref<1x1x128xf32, #tpu.memory_space<vmem>>, vector<1x1x128xf32>,
    } else {
    }
    return
  }
  func.func @transform_0(%arg0: i32, %arg1: i32) -> (i32, i32, i32) {
    %c0_i32 = arith.constant 0 : i32
    %c0_i32_0 = arith.constant 0 : i32
    %c0_i32_1 = arith.constant 0 : i32
    return %arg0, %c0_i32, %c0_i32_0 : i32, i32, i32
  }
  func.func @transform_1(%arg0: i32, %arg1: i32) -> (i32, i32, i32) {
    %c0_i32 = arith.constant 0 : i32
    %c0_i32_0 = arith.constant 0 : i32
    return %arg0, %arg1, %c0_i32 : i32, i32, i32
  }
  func.func @transform_2(%arg0: i32, %arg1: i32) -> (i32, i32, i32) {
    %c0_i32 = arith.constant 0 : i32
    %c0_i32_0 = arith.constant 0 : i32
    %c0_i32_1 = arith.constant 0 : i32
    return %arg0, %c0_i32, %c0_i32_0 : i32, i32, i32
  }
}

</mosaic_0001>

<bundles_post_ra>
// kernel: tpu_custom_call.1
= control target key start
LH: loop header
LB: loop body
LE: loop exit
PB: predicated region body
PF: predicated region fallthrough
CT: control target
= control target key end

     0   :  { %7 = vsyncpa [#allocation4], 0  ;;  %s1056_s0 = inlined_call_operand.vmem [shape: f32[2,3,128], index: 0, kind: input, shape index: {}]   ;;  %s1057_s1 = inlined_call_operand.vmem [shape: f32[2,48,3], index: 1, kind: input, shape index: {}]   ;;  %s1058_s2 = inlined_call_operand.hbm [shape: f32[2,1,128], index: 2, kind: output, shape index: {}]  }
   0x1   :  { %9 = vsyncpa [#allocation4 + $0x1], 0  ;;  %s789_s9 = smov 0   ;;  %s791_s10 = smov 0  }
   0x2   :  { %s793_s11 = smov 0   ;;  %s795_s12 = smov 0  }
   0x3   :  { %s797_s13 = smov 0   ;;  %s799_s14 = smov 0  }
   0x4 LB: > { %s610_s15 = sadd.s32 4294967295, %s765_s14   ;;  %s611_s16 = sadd.s32 4294967294, %s765_s14   ;;  %s765_s14 = sphi %s799_s14, %s15_s14   ;;  %s761_s13 = sphi %s797_s13, %s1085_s13   ;;  %s757_s12 = sphi %s795_s12, %s1084_s12   ;;  %s753_s11 = sphi %s793_s11, %s1083_s11   ;;  %s749_s10 = sphi %s791_s10, %s1082_s10   ;;  %s745_s9 = sphi %s789_s9, %s1081_s9  }
   0x5   : > { %s27_s17 = sadd.s32 1, %s761_s13  ;;  %s88_s18 = sadd.s32 1, %s753_s11 }
   0x6   : > { %p29_p0 = scmp.ge.s32.totalorder %s27_s17, 2  ;;  %p98_p1 = scmp.ne.s32.totalorder %s753_s11, %s749_s10 }
   0x7   : > { %p99_p2 = scmp.eq.s32.totalorder %s610_s15, 1  ;;  %p104_p3 = scmp.ne.s32.totalorder %s749_s10, %s745_s9 }
   0x8   : > { %s1087_s17 = smov (%p29_p0, %s27_s17), 0  ;;  %p105_p5 = scmp.eq.s32.totalorder %s611_s16, 1 }
   0x9   : > { %p829_p4 = por %p99_p2, %p98_p1  ;;  %s85_s20 = ssub.s32 %s761_s13, %s1087_s17 }
   0xa   : > { %p614_p6 = scmp.ge.s32.totalorder %s765_s14, 1  ;;  %p86_p7 = scmp.eq.s32.totalorder %s85_s20, 0 }
   0xb   : > { %p836_p8 = por %p105_p5, %p104_p3  ;;  %p143_p9 = scmp.lt.s32.totalorder %s765_s14, 3 }
   0xc   : > { %s842_s22 = scalar_select %p86_p7, %s753_s11, %s88_s18  }
   0xd   : > { %p144_p10 = pnand %p614_p6, %p143_p9 }
   0xe   : > { %p172_p11 = scmp.lt.s32.totalorder (!%p144_p10), %s757_s12, 1  ;;  %v767_v0 = vmov (!%p144_p10), 0   ;;  %s768_s28 = smov (!%p144_p10), 127   ;;  %v771_v63 = vmov (!%p144_p10), 1e+30  }
   0xf   : > { %147 = sbr.rel (%p144_p10) target bundleno = 517 (0x205), region = 28  ;;  %684 = vset.pattern.permute.xlu1 (!%p144_p10), %v767_v0  ;;  %683 = vset.pattern.permute.xlu0 (!%p144_p10), %v767_v0  ;;  %s769_s29 = smov (!%p144_p10), 126   ;;  %190 = vst [vmem:[#allocation2] sm:$0x1] (!%p144_p10), %v771_v63 }
  0x10   : > { %s170_s6 = sand.u32 (!%p144_p10), 1, %s749_s10   ;;  %s618_s7 = sshll.u32 (!%p144_p10), %s757_s12, 4 }
  0x11   : > { %s171_s8 = scalar_lea.vmem (!%p144_p10), [#allocation3], %s170_s6  ;;  %s1009_s20 = scalar_lea.hbm (!%p144_p10), %s1058_s2, %s618_s7 }
  0x12   : > { %s529_s15 = sshll.u32 (!%p144_p10), %s171_s8, 4  ;;  %s1011_s15 = int_to_ptr.vmem [resolvable:$true] %s529_s15 }
  0x16   : > { %s846_s23 = scalar_select %p172_p11, %s757_s12, 1 }
  0x17   : > { %s773_s12 = smov [#allocation3]  }
  0x18   : > { %s621_s24 = smul.u32 48, %s846_s23  ;;  %s615_s30 = sshll.u32 %s846_s23, 2 }
  0x19   : > { %s175_s5 = scalar_lea.vmem %s1056_s0, %s615_s30  ;;  %s517_s23 = scalar_lea.sflag [#allocation4], %s170_s6 }
  0x1a   : > { %s184_s27 = scalar_lea.vmem %s1057_s1, %s621_s24  ;;  %s687_s24 = scalar_lea.vmem %s1011_s15, 16 }
  0x1b   : > { %v852_v1 = vld [vmem:[%s184_s27 + $0x20] sm:$0xff]  ;;  %v856_v3 = vld [vmem:[%s184_s27 + $0x28] sm:$0xff]  ;;  %v872_v9 = vld [vmem:[%s184_s27 + $0x18] sm:$0xff]  ;;  %p688_p12 = scmp.ne.s32.totalorder %s1011_s15, %s687_s24  ;;  %s691_s25 = sshll.u32 %s773_s12, 4  ;;  %s692_s25 = int_to_ptr.vmem [resolvable:$false] %s691_s25 }
  0x1c   : > { %v854_v2 = vld [vmem:[%s184_s27] sm:$0xff]  ;;  %vm204_vm0 = vcmp.ne.f32.partialorder %v852_v1, 0.0  ;;  %vm205_vm2 = vcmp.ne.f32.partialorder %v856_v3, 0.0  ;;  %v861_v4 = vld [vmem:[%s184_s27 + $0x8] sm:$0xff]  ;;  %v874_v10 = vld [vmem:[%s184_s27 + $0x10] sm:$0xff]  ;;  %vm203_vm4 = vcmp.ne.f32.partialorder %v872_v9, 0.0  ;;  %p694_p1 = scmp.lt.s32.totalorder %s1011_s15, %s692_s25 }
  0x1d   : > { %vm200_vm1 = vcmp.ne.f32.partialorder %v854_v2, 0.0  ;;  %v210_v5 = vsel %vm204_vm0, 1, %v767_v0  ;;  %vm201_vm3 = vcmp.ne.f32.partialorder %v861_v4, 0.0  ;;  %v211_v7 = vsel %vm205_vm2, 1, %v767_v0  ;;  %p689_p13 = pnand %p688_p12, %p829_p4  ;;  %s693_s26 = scalar_lea.vmem %s692_s25, 32 }
  0x1e   : > { %v206_v6 = vsel %vm200_vm1, 1, %v767_v0  ;;  %220 = vrot.lane.b32.xlu1 %v210_v5, %s768_s28  ;;  %v207_v8 = vsel %vm201_vm3, 1, %v767_v0  ;;  %vm1059_vm5 = vcmp.ne.f32.partialorder %v874_v10, 0.0  ;;  %v209_v11 = vsel %vm203_vm4, 1, %v767_v0  ;;  %p695_p2 = scmp.lt.s32.totalorder %s693_s26, %s687_s24 }
  0x1f   : > { %212 = vrot.lane.b32.xlu0 %v206_v6, %s768_s28  ;;  %v208_v12 = vsel %vm1059_vm5, 1, %v767_v0  ;;  %v191_v0 = vld [vmem:[%s175_s5] sm:$0x1]  ;;  %p690_p0 = pneg %p689_p13 }
  0x20   : > { %p696_p3 = por %p695_p2, %p694_p1 }
  0x22   : > { %222 = vrot.lane.b32.xlu1 %v211_v7, %s768_s28  ;;  %p697_p5 = pnand %p696_p3, %p690_p0 }
  0x23   : > { %214 = vrot.lane.b32.xlu0 %v207_v8, %s768_s28 }
  0x26   : > { %238 = vrot.lane.b32.xlu1 %v207_v8, %s769_s29 }
  0x27   : > { %236 = vrot.lane.b32.xlu0 %v206_v6, %s769_s29 }
  0x2a   : > { %246 = vrot.lane.b32.xlu1 %v211_v7, %s769_s29  ;;  %v356_v7 = vlaneseq }
  0x2b   : > { %244 = vrot.lane.b32.xlu0 %v210_v5, %s769_s29 }
  0x2c   : > { %v357_v8 = vshrl.u32 %v356_v7, 7 }
  0x2e   : > { %218 = vrot.lane.b32.xlu1 %v209_v11, %s768_s28 }
  0x2f   : > { %216 = vrot.lane.b32.xlu0 %v208_v12, %s768_s28 }
  0x32   : > { %242 = vrot.lane.b32.xlu1 %v209_v11, %s769_s29 }
  0x33   : > { %240 = vrot.lane.b32.xlu0 %v208_v12, %s769_s29 }
  0x36   : > { %280 = vrot.lane.b32.xlu1 %v861_v4, %s768_s28 }
  0x37   : > { %278 = vrot.lane.b32.xlu0 %v854_v2, %s768_s28 }
  0x3a   : > { %288 = vrot.lane.b32.xlu1 %v856_v3, %s768_s28 }
  0x3b   : > { %286 = vrot.lane.b32.xlu0 %v852_v1, %s768_s28 }
  0x3e   : > { %284 = vrot.lane.b32.xlu1 %v872_v9, %s768_s28 }
  0x3f   : > { %282 = vrot.lane.b32.xlu0 %v874_v10, %s768_s28 }
  0x42   : > { %304 = vrot.lane.b32.xlu1 %v861_v4, %s769_s29 }
  0x43   : > { %302 = vrot.lane.b32.xlu0 %v854_v2, %s769_s29 }
  0x46   : > { %312 = vrot.lane.b32.xlu1 %v856_v3, %s769_s29 }
  0x47   : > { %310 = vrot.lane.b32.xlu0 %v852_v1, %s769_s29 }
  0x4a   : > { %308 = vrot.lane.b32.xlu1 %v872_v9, %s769_s29 }
  0x4b   : > { %306 = vrot.lane.b32.xlu0 %v874_v10, %s769_s29 }
  0x90   : > { %v221_v13 = vpop.permute.xlu1 %220 }
  0x91   : > { %v213_v14 = vpop.permute.xlu0 %212  ;;  %vm228_vm6 = vcmp.ne.s32.totalorder %v221_v13, 0 }
  0x92   : > { %vm224_vm7 = vcmp.ne.s32.totalorder %v213_v14, 0  ;;  %vm896_vm10 = vmor %vm204_vm0, %vm228_vm6  ;;  %vm770_vm6 = vmmov 1  }
  0x93   : > { %vm230_vm11 = vmor %vm200_vm1, %vm224_vm7 }
  0x94   : > { %v223_v15 = vpop.permute.xlu1 %222 }
  0x95   : > { %v215_v16 = vpop.permute.xlu0 %214  ;;  %vm229_vm8 = vcmp.ne.s32.totalorder %v223_v15, 0 }
  0x96   : > { %vm225_vm9 = vcmp.ne.s32.totalorder %v215_v16, 0  ;;  %vm904_vm12 = vmor %vm205_vm2, %vm229_vm8 }
  0x97   : > { %vm231_vm13 = vmor %vm201_vm3, %vm225_vm9 }
  0x98   : > { %v239_v19 = vpop.permute.xlu1 %238 }
  0x99   : > { %v237_v20 = vpop.permute.xlu0 %236  ;;  %vm249_vm14 = vcmp.ne.s32.totalorder %v239_v19, 0 }
  0x9a   : > { %vm248_vm15 = vcmp.ne.s32.totalorder %v237_v20, 0  ;;  %vm255_vm0 = vmor %vm231_vm13, %vm249_vm14 }
  0x9b   : > { %vm911_vm5 = vmxor %vm255_vm0, %vm770_vm6 }
  0x9c   : > { %vm254_vm1 = vmor %vm230_vm11, %vm248_vm15  ;;  %v247_v22 = vpop.permute.xlu1 %246  ;;  %v267_v24 = vsel %vm911_vm5, 1e+15, %v861_v4  ;;  %v772_v4 = vmov 0.0  }
  0x9d   : > { %v245_v23 = vpop.permute.xlu0 %244  ;;  %vm919_vm2 = vmxor %vm254_vm1, %vm770_vm6  ;;  %vm253_vm3 = vcmp.ne.s32.totalorder %v247_v22, 0  ;;  %333 = vperm.xlu1 %684, %v267_v24   ;;  %vm1074_vm1 = vcmp.ne.f32.partialorder %v874_v10, 0.0 }
  0x9e   : > { %vm252_vm7 = vcmp.ne.s32.totalorder %v245_v23, 0  ;;  %vm259_vm8 = vmor %vm904_vm12, %vm253_vm3  ;;  %v266_v26 = vsel %vm919_vm2, 1e+15, %v854_v2  ;;  %v193_v2 = vld [vmem:[%s175_s5 + $0x2] sm:$0x1] }
  0x9f   : > { %vm929_vm9 = vmxor %vm259_vm8, %vm770_vm6  ;;  %328 = vperm.xlu0 %683, %v266_v26  }
  0xa0   : > { %vm258_vm11 = vmor %vm896_vm10, %vm252_vm7  ;;  %v219_v28 = vpop.permute.xlu1 %218  ;;  %v271_v30 = vsel %vm929_vm9, 1e+15, %v856_v3 }
  0xa1   : > { %v217_v29 = vpop.permute.xlu0 %216  ;;  %vm939_vm12 = vmxor %vm258_vm11, %vm770_vm6  ;;  %vm227_vm10 = vcmp.ne.s32.totalorder %v219_v28, 0 }
  0xa2   : > { %v270_v32 = vsel %vm939_vm12, 1e+15, %v852_v1  ;;  %vm226_vm13 = vcmp.ne.s32.totalorder %v217_v29, 0  ;;  %vm233_vm15 = vmor %vm203_vm4, %vm227_vm10  ;;  %v192_v1 = vld [vmem:[%s175_s5 + $0x1] sm:$0x1]  ;;  %vm504_vm10 = vcmask 1040384  }
  0xa3   : > { %353 = vperm.xlu0 %683, %v271_v30   ;;  %348 = vperm.xlu1 %684, %v270_v32   ;;  %vm232_vm3 = vmor %vm1074_vm1, %vm226_vm13 }
  0xa4   : > { %v243_v33 = vpop.permute.xlu1 %242 }
  0xa5   : > { %v241_v34 = vpop.permute.xlu0 %240  ;;  %vm251_vm14 = vcmp.ne.s32.totalorder %v243_v33, 0 }
  0xa6   : > { %vm250_vm0 = vcmp.ne.s32.totalorder %v241_v34, 0  ;;  %vm257_vm7 = vmor %vm233_vm15, %vm251_vm14 }
  0xa7   : > { %vm256_vm8 = vmor %vm232_vm3, %vm250_vm0 }
  0xa8   : > { %v281_v35 = vpop.permute.xlu1 %280  ;;  %vm955_vm4 = vmxor %vm257_vm7, %vm770_vm6 }
  0xa9   : > { %v279_v36 = vpop.permute.xlu0 %278  ;;  %v297_v37 = vsel %vm911_vm5, 1e+15, %v281_v35  ;;  %vm964_vm11 = vmxor %vm256_vm8, %vm770_vm6  ;;  %v269_v47 = vsel %vm955_vm4, 1e+15, %v872_v9  ;;  %vm494_vm6 = vcmp.ne.f32.partialorder %v192_v1, 0.0  ;;  %v358_v9 = vsub.s32 0, %v357_v8 }
  0xaa   : > { %v296_v38 = vsel %vm919_vm2, 1e+15, %v279_v36  ;;  %379 = vperm.xlu0 %683, %v297_v37   ;;  %v268_v48 = vsel %vm964_vm11, 1e+15, %v874_v10 }
  0xab   : > { %374 = vperm.xlu1 %684, %v296_v38   ;;  %v359_v12 = vrot.slane %v191_v0, %v358_v9  ;;  %v405_v15 = vrot.slane %v192_v1, %v358_v9 }
  0xac   : > { %v289_v39 = vpop.permute.xlu1 %288 }
  0xad   : > { %v287_v40 = vpop.permute.xlu0 %286  ;;  %v301_v42 = vsel %vm929_vm9, 1e+15, %v289_v39 }
  0xae   : > { %v300_v43 = vsel %vm939_vm12, 1e+15, %v287_v40  ;;  %399 = vperm.xlu0 %683, %v301_v42  }
  0xaf   : > { %394 = vperm.xlu1 %684, %v300_v43  }
  0xb0   : > { %v285_v45 = vpop.permute.xlu1 %284 }
  0xb1   : > { %v283_v46 = vpop.permute.xlu0 %282  ;;  %v299_v51 = vsel %vm955_vm4, 1e+15, %v285_v45 }
  0xb2   : > { %343 = vperm.xlu0 %683, %v269_v47   ;;  %v298_v52 = vsel %vm964_vm11, 1e+15, %v283_v46 }
  0xb3   : > { %338 = vperm.xlu1 %684, %v268_v48   ;;  %v457_v48 = vrot.slane %v193_v2, %v358_v9 }
  0xb4   : > { %v305_v49 = vpop.permute.xlu1 %304 }
  0xb5   : > { %v303_v50 = vpop.permute.xlu0 %302  ;;  %v321_v55 = vsel %vm911_vm5, 1e+15, %v305_v49  ;;  %vm493_vm5 = vcmp.ne.f32.partialorder %v191_v0, 0.0 }
  0xb6   : > { %389 = vperm.xlu0 %683, %v299_v51   ;;  %v320_v56 = vsel %vm919_vm2, 1e+15, %v303_v50  ;;  %vm495_vm2 = vmor %vm493_vm5, %vm494_vm6 }
  0xb7   : > { %384 = vperm.xlu1 %684, %v298_v52  }
  0xb8   : > { %v313_v53 = vpop.permute.xlu1 %312 }
  0xb9   : > { %v311_v54 = vpop.permute.xlu0 %310  ;;  %v325_v57 = vsel %vm929_vm9, 1e+15, %v313_v53  ;;  %vm496_vm9 = vcmp.ne.f32.partialorder %v193_v2, 0.0 }
  0xba   : > { %431 = vperm.xlu0 %683, %v321_v55   ;;  %v324_v58 = vsel %vm939_vm12, 1e+15, %v311_v54  ;;  %vm994_vm12 = vmor %vm495_vm2, %vm496_vm9 }
  0xbb   : > { %426 = vperm.xlu1 %684, %v320_v56   ;;  %v617_v5 = vsel %vm994_vm12, 1.0, %v772_v4 }
  0xbc   : > { %v309_v59 = vpop.permute.xlu1 %308  ;;  %v505_v6 = vsel %vm504_vm10, %v617_v5, 0.0 }
  0xbd   : > { %v307_v60 = vpop.permute.xlu0 %306  ;;  %v323_v61 = vsel %vm955_vm4, 1e+15, %v309_v59 }
  0xbe   : > { %451 = vperm.xlu0 %683, %v325_v57   ;;  %v322_v62 = vsel %vm964_vm11, 1e+15, %v307_v60 }
  0xbf   : > { %446 = vperm.xlu1 %684, %v324_v58  }
  0xc2   : > { %441 = vperm.xlu0 %683, %v323_v61  }
  0xc3   : > { %436 = vperm.xlu1 %684, %v322_v62  }
  0xe7   : > { %506 = vadd.xlane.f32.xlu1 %v505_v6 }
 0x11c   : > { %v334_v10 = vpop.permute.xlu1 %333 }
 0x11d   : > { %v361_v16 = vsub.f32 %v334_v10, %v359_v12 }
 0x11e   : > { %v329_v11 = vpop.permute.xlu0 %328 }
 0x11f   : > { %v360_v17 = vsub.f32 %v329_v11, %v359_v12  ;;  %v367_v22 = vmul.f32 %v361_v16, %v361_v16 }
 0x121   : > { %v366_v23 = vmul.f32 %v360_v17, %v360_v17 }
 0x122   : > { %v349_v13 = vpop.permute.xlu1 %348  ;;  %v354_v14 = vpop.permute.xlu0 %353 }
 0x123   : > { %v364_v24 = vsub.f32 %v349_v13, %v359_v12  ;;  %v365_v25 = vsub.f32 %v354_v14, %v359_v12 }
 0x125   : > { %v370_v34 = vmul.f32 %v364_v24, %v364_v24  ;;  %v371_v35 = vmul.f32 %v365_v25, %v365_v25 }
 0x129   : > { %v380_v19 = vpop.permute.xlu0 %379 }
 0x12a   : > { %v375_v18 = vpop.permute.xlu1 %374  ;;  %v407_v21 = vsub.f32 %v380_v19, %v405_v15 }
 0x12b   : > { %v406_v20 = vsub.f32 %v375_v18, %v405_v15 }
 0x12c   : > { %v413_v27 = vmul.f32 %v407_v21, %v407_v21 }
 0x12d   : > { %v412_v26 = vmul.f32 %v406_v20, %v406_v20  ;;  %v400_v29 = vpop.permute.xlu0 %399 }
 0x12e   : > { %v395_v28 = vpop.permute.xlu1 %394  ;;  %v419_v31 = vadd.f32 %v413_v27, %v367_v22  ;;  %v411_v33 = vsub.f32 %v400_v29, %v405_v15 }
 0x12f   : > { %v418_v30 = vadd.f32 %v412_v26, %v366_v23  ;;  %v410_v32 = vsub.f32 %v395_v28, %v405_v15  ;;  %v487_v26 = vld [vmem:[#allocation2] sm:$0x1] }
 0x130   : > { %v417_v37 = vmul.f32 %v411_v33, %v411_v33 }
 0x131   : > { %v416_v36 = vmul.f32 %v410_v32, %v410_v32  ;;  %v344_v39 = vpop.permute.xlu0 %343 }
 0x132   : > { %v339_v38 = vpop.permute.xlu1 %338  ;;  %v423_v41 = vadd.f32 %v417_v37, %v371_v35  ;;  %v363_v43 = vsub.f32 %v344_v39, %v359_v12 }
 0x133   : > { %v422_v40 = vadd.f32 %v416_v36, %v370_v34  ;;  %v362_v42 = vsub.f32 %v339_v38, %v359_v12 }
 0x134   : > { %v369_v50 = vmul.f32 %v363_v43, %v363_v43 }
 0x135   : > { %v390_v45 = vpop.permute.xlu0 %389  ;;  %v368_v49 = vmul.f32 %v362_v42, %v362_v42 }
 0x136   : > { %v385_v44 = vpop.permute.xlu1 %384  ;;  %v409_v47 = vsub.f32 %v390_v45, %v405_v15 }
 0x137   : > { %v408_v46 = vsub.f32 %v385_v44, %v405_v15 }
 0x138   : > { %v415_v52 = vmul.f32 %v409_v47, %v409_v47 }
 0x139   : > { %v414_v51 = vmul.f32 %v408_v46, %v408_v46  ;;  %v432_v54 = vpop.permute.xlu0 %431 }
 0x13a   : > { %v427_v53 = vpop.permute.xlu1 %426  ;;  %v421_v56 = vadd.f32 %v415_v52, %v369_v50  ;;  %v459_v58 = vsub.f32 %v432_v54, %v457_v48 }
 0x13b   : > { %v420_v55 = vadd.f32 %v414_v51, %v368_v49  ;;  %v458_v57 = vsub.f32 %v427_v53, %v457_v48 }
 0x13c   : > { %v465_v60 = vmul.f32 %v459_v58, %v459_v58 }
 0x13d   : > { %v464_v59 = vmul.f32 %v458_v57, %v458_v57  ;;  %v452_v62 = vpop.permute.xlu0 %451 }
 0x13e   : > { %v447_v61 = vpop.permute.xlu1 %446  ;;  %v471_v0 = vadd.f32 %v465_v60, %v419_v31  ;;  %v463_v4 = vsub.f32 %v452_v62, %v457_v48 }
 0x13f   : > { %v470_v63 = vadd.f32 %v464_v59, %v418_v30  ;;  %v462_v1 = vsub.f32 %v447_v61, %v457_v48 }
 0x140   : > { %v469_v2 = vmul.f32 %v463_v4, %v463_v4 }
 0x141   : > { %v468_v5 = vmul.f32 %v462_v1, %v462_v1  ;;  %v442_v7 = vpop.permute.xlu0 %441 }
 0x142   : > { %v437_v6 = vpop.permute.xlu1 %436  ;;  %v475_v9 = vadd.f32 %v469_v2, %v423_v41  ;;  %v461_v11 = vsub.f32 %v442_v7, %v457_v48 }
 0x143   : > { %v474_v8 = vadd.f32 %v468_v5, %v422_v40  ;;  %v460_v10 = vsub.f32 %v437_v6, %v457_v48 }
 0x144   : > { %v477_v13 = vmin.f32 %v471_v0, %v475_v9  ;;  %v467_v15 = vmul.f32 %v461_v11, %v461_v11 }
 0x145   : > { %v476_v12 = vmin.f32 %v470_v63, %v474_v8  ;;  %v466_v14 = vmul.f32 %v460_v10, %v460_v10 }
 0x146   : > { %v473_v18 = vadd.f32 %v467_v15, %v421_v56 }
 0x147   : > { %v478_v16 = vmin.f32 %v476_v12, %v477_v13  ;;  %v472_v17 = vadd.f32 %v466_v14, %v420_v55 }
 0x149   : > { %v479_v19 = vmin.f32 %v472_v17, %v473_v18 }
 0x14b   : > { %v480_v20 = vmin.f32 %v478_v16, %v479_v19 }
 0x14d   : > { %v481_v21 = vrot.slane %v480_v20, 4 }
 0x14f   : > { %v482_v22 = vmin.f32 %v480_v20, %v481_v21 }
 0x151   : > { %v483_v23 = vrot.slane %v482_v22, 2 }
 0x153   : > { %v484_v24 = vmin.f32 %v482_v22, %v483_v23 }
 0x155   : > { %v485_v25 = vrot.slane %v484_v24, 1 }
 0x157   : > { %v486_v27 = vmin.f32 %v484_v24, %v485_v25 }
 0x159   : > { %v488_v28 = vmin.f32 %v487_v26, %v486_v27 }
 0x15b   : > { %489 = vst [vmem:[#allocation2] sm:$0x1] %v488_v28 }
 0x162   : > { %v498_v29 = vld [vmem:[#allocation2] sm:$0x1] }
 0x163   : > { %vm499_vm13 = vcmp.lt.f32.partialorder %v498_v29, 1e+29 }
 0x164   : > { %vm500_vm14 = vmand %vm994_vm12, %vm499_vm13 }
 0x165   : > { %v501_v30 = vsel %vm500_vm14, %v498_v29, 0.0 }
 0x166   : > { %v508_v31 = vsel %vm504_vm10, %v501_v30, 0.0 }
 0x167   : > { %509 = vadd.xlane.f32.xlu0 %v508_v31 }
 0x174   : > { %v507_v32 = vpop.xlane.xlu1 %506 }
 0x175   : > { %v511_v33 = vmax.f32 %v507_v32, 1.0 }
 0x177   : > { %v512_v34 = vmul.f32 3.0, %v511_v33 }
 0x179   : > { %685 = vrcp.f32 %v512_v34 }
 0x183   : > { %v686_v35 = vpop.eup %685 }
 0x1f4   : > { %v510_v36 = vpop.xlane.xlu0 %509 }
 0x1f5   : > { %v514_v37 = vmul.f32 %v686_v35, %v510_v36 }
 0x1f7   : > { %515 = vst [vmem:[%s171_s8] sm:$0x1] %v514_v37 }
 0x1f8   : > { %700 = shalt.err (!%p697_p5)
}
 0x1f9   : > { %s701_s27 = scalar_lea.hbm %s1009_s20, 16  ;;  %s705_s30 = scalar_lea.hbm %s1058_s2, 32 }
 0x1fa   : > { %p702_p6 = scmp.ne.s32.totalorder %s1009_s20, %s701_s27  ;;  %p706_p10 = scmp.lt.u32.totalorder %s1009_s20, %s1058_s2 }
 0x1fb   : > { %p707_p11 = scmp.lt.u32.totalorder %s705_s30, %s701_s27  ;;  %p709_p13 = scmp.lt.u32.totalorder %s701_s27, %s1009_s20 }
 0x1fc   : > { %p703_p7 = pnand %p702_p6, %p829_p4 }
 0x1fd   : > { %p708_p12 = por %p707_p11, %p706_p10 }
 0x1fe   : > { %p704_p9 = pneg %p703_p7 }
 0x1ff   : > { %p710_p0 = por %p709_p13, %p708_p12 }
 0x201   : > { %p711_p1 = pnand %p710_p0, %p704_p9 }
 0x203   : > { %714 = shalt.err (!%p711_p1)
}
 0x204   : > { %622 = dma.vmem_to_hbm [thread:$0]  (%p829_p4), %s1011_s15, 16, %s1009_s20, %s517_s23  }
 0x205 PF: > { %p628_p2 = scmp.ge.s32.totalorder %s765_s14, 2  ;;  %s541_s5 = sand.u32 1, %s745_s9  }
 0x206   : > { %s542_s6 = scalar_lea.sflag [#allocation4], %s541_s5 }
 0x207   : > { %p625_p3 = pnand %p628_p2, %p836_p8 }
 0x209   : > { %740 = dma.done.wait (!%p625_p3), %s542_s6, 16  }
 0x20a   : > { %742 = vsyncadd (!%p625_p3), %s542_s6, 4294967280  ;;  %s15_s14 = sadd.s32 1, %s765_s14   ;;  %s1081_s9 = smov %s749_s10 }
 0x20b   : > { %p12_p5 = scmp.ge.s32.totalorder %s15_s14, 4   ;;  %s1082_s10 = smov %s753_s11 }
 0x20c   : > { %s1083_s11 = smov %s842_s22  ;;  %s1084_s12 = smov %s761_s13 }
 0x20d   : > { %s1085_s13 = smov %s1087_s17  ;;  %14 = sbr.rel (!%p12_p5) target bundleno = 4 (0x4), region = 74 }
 0x214   :  { %546 = vsyncpa [#allocation4], 1 }
 0x215   :  { %548 = vsyncpa [#allocation4 + $0x1], 1 }

</bundles_post_ra>
